<compile_context>
chip_gen: v6e
topology: v6e:2x2x1
jax: 0.10.0
libtpu: 0.0.40
codegen_flags: <defaults>
</compile_context>

<pallas_src>
import functools

import jax
import jax.numpy as jnp
from jax.experimental import pallas as pl
from jax.experimental.pallas import tpu as pltpu

_LANES = 128


def _bce_elem(x, t):
    """Numerically-stable elementwise BCE-with-logits (matches torch)."""
    x = x.astype(jnp.float32)
    t = t.astype(jnp.float32)
    return jnp.maximum(x, 0.0) - x * t + jnp.log1p(jnp.exp(-jnp.abs(x)))


def _accum(acc_ref, val, tm):
    """Accumulate a (tm,128) value into the small accumulator scratch."""
    if tm % 8 == 0:
        # (tm,128) -> (tm//8, 8, 128): each (8,128) slice is one native tile,
        # so the reshape is free and the axis-0 reduce is pure VPU adds.
        acc_ref[...] += jnp.sum(val.reshape(tm // 8, 8, _LANES), axis=0)
    else:
        # Tiny-input path (single full-extent block with rows not a multiple
        # of 8): one cross-sublane reduce, perf-irrelevant at this size.
        acc_ref[...] += jnp.sum(val, axis=0, keepdims=True)


def _bce_sum_kernel(x_ref, t_ref, out_ref, acc_ref, *,
                    tm, inner_steps, rows_valid, full_blocks, any_masking):
    """grid = (cores, inner_steps); axis 1 walks row-blocks (reduction)."""
    c = pl.program_id(0)
    i = pl.program_id(1)

    @pl.when(i == 0)
    def _():
        acc_ref[...] = jnp.zeros(acc_ref.shape, acc_ref.dtype)

    bce = _bce_elem(x_ref[...], t_ref[...])

    if any_masking:
        # Logical (un-clamped) block index; the index_map clamps overflow
        # blocks onto the last real block, and we zero their contribution.
        rb = c * inner_steps + i
        is_interior = rb < full_blocks

        @pl.when(is_interior)
        def _():
            _accum(acc_ref, bce, tm)          # mask-free fast path

        @pl.when(jnp.logical_not(is_interior))
        def _():
            # Row-index compare only (the lane dimension is always fully
            # valid: the <128 tail is handled in the wrapper).
            row = jax.lax.broadcasted_iota(jnp.int32, bce.shape, 0)
            ok = (rb * tm + row) < rows_valid
            # where (not multiply-by-mask): garbage rows cannot poison the
            # sum even if they contain NaN/Inf.
            _accum(acc_ref, jnp.where(ok, bce, 0.0), tm)
    else:
        _accum(acc_ref, bce, tm)

    @pl.when(i == inner_steps - 1)
    def _():
        out_ref[0, 0] = jnp.sum(acc_ref[...])   # single small XLU reduce


def _default_num_cores():
    # Only split the leading grid axis on chips with 2 TensorCores (v7x).
    # On 1-TC chips (v5e/v6e) the split is a serial loop plus extra masking.
    try:
        kind = jax.devices()[0].device_kind.lower()
    except Exception:
        return 1
    return 2 if "v7" in kind else 1


def bce_with_logits_loss_weighted(x, target, *, tm=8192, n_cores=None):
    """Forward of BCEWithLogitsLossWeighted(weighted=False): mean BCE-with-logits."""
    assert x.shape == target.shape
    n_valid = int(x.size)
    assert n_valid > 0

    xf = x.reshape(-1)
    tf = target.reshape(-1)

    rows = n_valid // _LANES
    aligned = rows * _LANES
    tail = n_valid - aligned

    # <128-element flat tail: plain jnp in the wrapper (no full-array pad,
    # no per-element lane mask in the kernel).
    tail_sum = jnp.float32(0.0)
    if tail:
        tail_sum = jnp.sum(_bce_elem(xf[aligned:], tf[aligned:]))

    if rows == 0:
        return tail_sum / jnp.float32(n_valid)

    if tail:
        # At most one slice copy per input (only when total isn't 128-aligned).
        xf = xf[:aligned]
        tf = tf[:aligned]
    x2 = xf.reshape(rows, _LANES)
    t2 = tf.reshape(rows, _LANES)

    if n_cores is None:
        n_cores = _default_num_cores()

    tm = max(8, (int(tm) // 8) * 8)
    tm_eff = min(tm, rows)                  # full-extent block if rows < tm
    nblocks = pl.cdiv(rows, tm_eff)
    n_cores = max(1, min(int(n_cores), nblocks))
    inner = pl.cdiv(nblocks, n_cores)

    full_blocks = rows // tm_eff            # blocks with no ragged rows
    any_masking = full_blocks < n_cores * inner

    acc_rows = 8 if tm_eff % 8 == 0 else 1

    kernel = functools.partial(
        _bce_sum_kernel, tm=tm_eff, inner_steps=inner, rows_valid=rows,
        full_blocks=full_blocks, any_masking=any_masking)

    def in_map(c, i):
        # Clamp overflow steps onto the last block; the kernel zeroes them.
        return (jnp.minimum(c * inner + i, nblocks - 1), 0)

    partials = pl.pallas_call(
        kernel,
        out_shape=jax.ShapeDtypeStruct((n_cores, 1), jnp.float32),
        grid_spec=pltpu.PrefetchScalarGridSpec(
            num_scalar_prefetch=0,
            grid=(n_cores, inner),
            in_specs=[
                pl.BlockSpec((tm_eff, _LANES), in_map),
                pl.BlockSpec((tm_eff, _LANES), in_map),
            ],
            out_specs=pl.BlockSpec((1, 1), lambda c, i: (c, 0),
                                   memory_space=pltpu.MemorySpace.SMEM),
            scratch_shapes=[pltpu.VMEM((acc_rows, _LANES), jnp.float32)],
        ),
        # TODO(synk): on v7x, verify in xprof that the leading "parallel" axis
        # actually shards across both TensorCores; if not, switch it to
        # pltpu.CORE_PARALLEL (or pl.core_map over a tensorcore mesh).
        compiler_params=pltpu.CompilerParams(
            dimension_semantics=("parallel", "arbitrary"),
            vmem_limit_bytes=48 << 20),
    )(x2, t2)

    # weighted=False, to_ignore=None -> sum(weight_mask) == n_valid (static).
    return (jnp.sum(partials) + tail_sum) / jnp.float32(n_valid)

# TODO(synk): the weighted=True / to_ignore paths of generate_weight_mask
# (data-dependent per-image unique-label pixel counts) are not implemented;
# only the module's default weighted=False, to_ignore=None forward is covered.


def _reference_loss(x, target):
    b = _bce_elem(x, target)
    return jnp.sum(b) / jnp.float32(b.size)


def _check(name, out, ref, rtol=1e-5, atol=1e-6):
    assert jnp.allclose(out, ref, rtol=rtol, atol=atol), (name, float(out), float(ref))


if __name__ == "__main__":
    key = jax.random.PRNGKey(0)
    ks = jax.random.split(key, 10)

    # 1) Aligned [N,H,W] case: rows=16 (multiple of 8), single-block fast path.
    x1 = jax.random.normal(ks[0], (2, 32, 32), jnp.float32)
    t1 = jax.random.uniform(ks[1], (2, 32, 32), jnp.float32)
    o1 = jax.block_until_ready(bce_with_logits_loss_weighted(x1, t1))
    _check("aligned", o1, _reference_loss(x1, t1))

    # 2) Original module example shape: rows=4 (< 8), tiny-accumulator path.
    x2 = jax.random.normal(ks[2], (2, 16, 16), jnp.float32)
    t2 = jax.random.uniform(ks[3], (2, 16, 16), jnp.float32)
    o2 = jax.block_until_ready(bce_with_logits_loss_weighted(x2, t2))
    _check("small", o2, _reference_loss(x2, t2))

    # 3) Ragged total (<128 tail handled in the wrapper).
    x3 = jax.random.normal(ks[4], (3, 17, 23), jnp.float32)
    t3 = jax.random.uniform(ks[5], (3, 17, 23), jnp.float32)
    o3 = jax.block_until_ready(bce_with_logits_loss_weighted(x3, t3))
    _check("ragged_tail", o3, _reference_loss(x3, t3))

    # 4) Multi-block walk with a ragged last block and core-split overflow
    #    (small tm / n_cores=2 forced to exercise the gated-mask path).
    x4 = jax.random.normal(ks[6], (4, 100, 100), jnp.float32)
    t4 = jax.random.uniform(ks[7], (4, 100, 100), jnp.float32)
    o4 = jax.block_until_ready(
        bce_with_logits_loss_weighted(x4, t4, tm=64, n_cores=2))
    _check("multiblock_masked", o4, _reference_loss(x4, t4))

    # 5) bf16 inputs (up-cast on-chip; halves HBM traffic).
    x5 = jax.random.normal(ks[8], (2, 32, 32), jnp.float32).astype(jnp.bfloat16)
    t5 = jax.random.uniform(ks[9], (2, 32, 32), jnp.float32).astype(jnp.bfloat16)
    o5 = jax.block_until_ready(bce_with_logits_loss_weighted(x5, t5))
    _check("bf16", o5, _reference_loss(x5, t5), rtol=1e-4, atol=1e-5)

    print("KERNEL_OK")
</pallas_src>

<mosaic_0001>
module attributes {stable_mosaic.version = 11 : i64} {
  func.func @_bce_sum_kernel(%arg0: i32, %arg1: i32, %arg2: memref<16x128xf32, #tpu.memory_space<vmem>>, %arg3: memref<16x128xf32, #tpu.memory_space<vmem>>, %arg4: memref<1x1xf32, #tpu.memory_space<smem>>, %arg5: memref<8x128xf32, #tpu.memory_space<vmem>>) attributes {dimension_semantics = [#tpu.dimension_semantics<parallel>, #tpu.dimension_semantics<arbitrary>], iteration_bounds = array<i64: 1, 1>, scalar_prefetch = 0 : i64, scratch_operands = 1 : i64, tpu.core_type = #tpu.core_type<tc>, window_params = [{transform_indices = @transform_0, window_bounds = array<i64: 16, 128>}, {transform_indices = @transform_1, window_bounds = array<i64: 16, 128>}, {transform_indices = @transform_2, window_bounds = array<i64: 1, 1>}]} {
    %c0_i32 = arith.constant 0 : i32
    %0 = arith.cmpi eq, %arg1, %c0_i32 : i32
    %1 = arith.extui %0 : i1 to i32
    %c0_i32_0 = arith.constant 0 : i32
    %2 = arith.cmpi ne, %1, %c0_i32_0 : i32
    scf.if %2 {
      %cst_12 = arith.constant 0.000000e+00 : f32
      %23 = vector.broadcast %cst_12 : f32 to vector<8x128xf32>
      %c0_13 = arith.constant 0 : index
      %c0_14 = arith.constant 0 : index
      %24 = vector.load %arg5[%c0_13, %c0_14] : memref<8x128xf32, #tpu.memory_space<vmem>>, vector<8x128xf32>
      tpu.vector_store %arg5[%c0_13, %c0_14], %23 {strides = array<i32>} : memref<8x128xf32, #tpu.memory_space<vmem>>, vector<8x128xf32>,
    } else {
    }
    %c0 = arith.constant 0 : index
    %c0_1 = arith.constant 0 : index
    %3 = vector.load %arg2[%c0, %c0_1] : memref<16x128xf32, #tpu.memory_space<vmem>>, vector<16x128xf32>
    %c0_2 = arith.constant 0 : index
    %c0_3 = arith.constant 0 : index
    %4 = vector.load %arg3[%c0_2, %c0_3] : memref<16x128xf32, #tpu.memory_space<vmem>>, vector<16x128xf32>
    %cst = arith.constant 0.000000e+00 : f32
    %5 = vector.broadcast %cst : f32 to vector<16x128xf32>
    %6 = arith.maximumf %3, %5 : vector<16x128xf32>
    %7 = arith.mulf %3, %4 : vector<16x128xf32>
    %8 = arith.subf %6, %7 : vector<16x128xf32>
    %9 = math.absf %3 : vector<16x128xf32>
    %cst_4 = arith.constant 0.000000e+00 : f32
    %10 = vector.broadcast %cst_4 : f32 to vector<16x128xf32>
    %11 = arith.subf %10, %9 : vector<16x128xf32>
    %12 = math.exp %11 : vector<16x128xf32>
    %13 = math.log1p %12 : vector<16x128xf32>
    %14 = arith.addf %8, %13 : vector<16x128xf32>
    %c0_5 = arith.constant 0 : index
    %c0_6 = arith.constant 0 : index
    %15 = vector.load %arg5[%c0_5, %c0_6] : memref<8x128xf32, #tpu.memory_space<vmem>>, vector<8x128xf32>
    %16 = vector.shape_cast %14 : vector<16x128xf32> to vector<2x8x128xf32>
    %cst_7 = arith.constant dense<0.000000e+00> : vector<8x128xf32>
    %17 = vector.multi_reduction <add>, %16, %cst_7 [0] : vector<2x8x128xf32> to vector<8x128xf32>
    %18 = arith.addf %15, %17 : vector<8x128xf32>
    %c0_8 = arith.constant 0 : index
    %c0_9 = arith.constant 0 : index
    %19 = vector.load %arg5[%c0_8, %c0_9] : memref<8x128xf32, #tpu.memory_space<vmem>>, vector<8x128xf32>
    tpu.vector_store %arg5[%c0_8, %c0_9], %18 {strides = array<i32>} : memref<8x128xf32, #tpu.memory_space<vmem>>, vector<8x128xf32>,
    %c0_i32_10 = arith.constant 0 : i32
    %20 = arith.cmpi eq, %arg1, %c0_i32_10 : i32
    %21 = arith.extui %20 : i1 to i32
    %c0_i32_11 = arith.constant 0 : i32
    %22 = arith.cmpi ne, %21, %c0_i32_11 : i32
    scf.if %22 {
      %c0_12 = arith.constant 0 : index
      %c0_13 = arith.constant 0 : index
      %23 = vector.load %arg5[%c0_12, %c0_13] : memref<8x128xf32, #tpu.memory_space<vmem>>, vector<8x128xf32>
      %24 = vector.shape_cast %23 : vector<8x128xf32> to vector<1x8x128xf32>
      %cst_14 = arith.constant dense<0.000000e+00> : vector<1xf32>
      %25 = vector.multi_reduction <add>, %24, %cst_14 [1, 2] : vector<1x8x128xf32> to vector<1xf32>
      %26 = vector.shape_cast %25 : vector<1xf32> to vector<1x1x1xf32>
      %27 = vector.extract %26[0, 0, 0] : f32 from vector<1x1x1xf32>
      %c0_15 = arith.constant 0 : index
      %c0_16 = arith.constant 0 : index
      %28 = memref.load %arg4[%c0_15, %c0_16] : memref<1x1xf32, #tpu.memory_space<smem>>
      memref.store %27, %arg4[%c0_15, %c0_16] : memref<1x1xf32, #tpu.memory_space<smem>>
    } else {
    }
    return
  }
  func.func @transform_0(%arg0: i32, %arg1: i32) -> (i32, i32) {
    %c1_i32 = arith.constant 1 : i32
    %0 = arith.muli %arg0, %c1_i32 : i32
    %1 = arith.addi %0, %arg1 : i32
    %c0_i32 = arith.constant 0 : i32
    %2 = arith.minsi %1, %c0_i32 : i32
    %c0_i32_0 = arith.constant 0 : i32
    %c0_i32_1 = arith.constant 0 : i32
    return %2, %c0_i32_0 : i32, i32
  }
  func.func @transform_1(%arg0: i32, %arg1: i32) -> (i32, i32) {
    %c1_i32 = arith.constant 1 : i32
    %0 = arith.muli %arg0, %c1_i32 : i32
    %1 = arith.addi %0, %arg1 : i32
    %c0_i32 = arith.constant 0 : i32
    %2 = arith.minsi %1, %c0_i32 : i32
    %c0_i32_0 = arith.constant 0 : i32
    %c0_i32_1 = arith.constant 0 : i32
    return %2, %c0_i32_0 : i32, i32
  }
  func.func @transform_2(%arg0: i32, %arg1: i32) -> (i32, i32) {
    %c0_i32 = arith.constant 0 : i32
    %c0_i32_0 = arith.constant 0 : i32
    return %arg0, %c0_i32 : i32, i32
  }
}

</mosaic_0001>

<bundles_post_ra>
// kernel: tpu_custom_call.1
= control target key start
LH: loop header
LB: loop body
LE: loop exit
PB: predicated region body
PF: predicated region fallthrough
CT: control target
= control target key end

     0   :  { %7 = vsyncpa [#allocation4], 0  ;;  %s239_s0 = inlined_call_operand.hbm [shape: f32[16,128], index: 0, kind: input, shape index: {}]   ;;  %s240_s1 = inlined_call_operand.hbm [shape: f32[16,128], index: 1, kind: input, shape index: {}]   ;;  %s241_s2 = inlined_call_operand.hbm [shape: f32[1,1], index: 2, kind: output, shape index: {}]  }
   0x1   :  { %8 = vsyncpa [#allocation7], 0 }
   0x2   :  { %9 = vsyncpa [#allocation5], 0  ;;  %s210_s9 = smov [#allocation3]  }
   0x3   :  { %s21_s10 = sshll.u32 %s210_s9, 4  ;;  %s22_s10 = int_to_ptr.vmem [resolvable:$true] %s21_s10 }
   0x4   :  { %s164_s11 = scalar_lea.vmem %s22_s10, 256  ;;  %p169_p1 = scmp.lt.s32.totalorder %s22_s10, %s22_s10 }
   0x5   :  { %p165_p0 = scmp.ne.s32.totalorder %s22_s10, %s164_s11  ;;  %p170_p2 = scmp.lt.s32.totalorder %s164_s11, %s164_s11 }
   0x7   :  { %p171_p3 = por %p170_p2, %p169_p1 }
   0x9   :  { %p172_p4 = pnand %p171_p3, %p165_p0 }
   0xb   :  { %175 = shalt.err (!%p172_p4)
}
   0xc   :  { %s211_s12 = smov 128   ;;  %s212_s13 = smov 8  }
   0xd   :  { %27 = dma.hbm_to_vmem [thread:$0]  %s239_s0, 256, %s22_s10, [#allocation4], %s211_s12, %s211_s12, %s212_s13  }
   0xe   :  { %s213_s16 = smov [#allocation6]  }
   0xf   :  { %s39_s17 = sshll.u32 %s213_s16, 4  ;;  %s40_s17 = int_to_ptr.vmem [resolvable:$true] %s39_s17 }
  0x10   :  { %s184_s18 = scalar_lea.vmem %s40_s17, 256  ;;  %p189_p6 = scmp.lt.s32.totalorder %s40_s17, %s40_s17 }
  0x11   :  { %p185_p5 = scmp.ne.s32.totalorder %s40_s17, %s184_s18  ;;  %p190_p7 = scmp.lt.s32.totalorder %s184_s18, %s184_s18 }
  0x13   :  { %p191_p8 = por %p190_p7, %p189_p6 }
  0x15   :  { %p192_p9 = pnand %p191_p8, %p185_p5 }
  0x17   :  { %195 = shalt.err (!%p192_p9)
}
  0x18   :  { %45 = dma.hbm_to_vmem [thread:$0]  %s240_s1, 256, %s40_s17, [#allocation7], %s211_s12, %s211_s12, %s212_s13  }
  0x19   :  { %204 = dma.done.wait [#allocation4], 256  }
  0x1a   :  { %205 = vsyncadd [#allocation4], 4294967040 }
  0x1b   :  { %206 = dma.done.wait [#allocation7], 256  }
  0x1c   :  { %207 = vsyncadd [#allocation7], 4294967040  ;;  %v65_v0 = vld [vmem:[#allocation3] sm:$0xff]  ;;  %v66_v1 = vld [vmem:[#allocation3 + $0x8] sm:$0xff]  ;;  %s214_s1 = smov [#allocation8]  }
  0x1d   :  { %v75_v2 = vand.u32 2147483647, %v65_v0  ;;  %v76_v3 = vand.u32 2147483647, %v66_v1  ;;  %v67_v14 = vld [vmem:[#allocation6] sm:$0xff]  ;;  %v68_v15 = vld [vmem:[#allocation6 + $0x8] sm:$0xff] }
  0x1e   :  { %v69_v17 = vmax.f32 %v65_v0, 0.0  ;;  %v71_v18 = vmul.f32 %v67_v14, %v65_v0  ;;  %v70_v21 = vmax.f32 %v66_v1, 0.0  ;;  %v72_v22 = vmul.f32 %v68_v15, %v66_v1 }
  0x1f   :  { %v77_v4 = vsub.f32 0.0, %v75_v2  ;;  %v78_v5 = vsub.f32 0.0, %v76_v3 }
  0x20   :  { %v73_v26 = vsub.f32 %v69_v17, %v71_v18  ;;  %v74_v29 = vsub.f32 %v70_v21, %v72_v22 }
  0x21   :  { %v79_v6 = vmul.f32 1.442695, %v77_v4  ;;  %v81_v7 = vmul.f32 1.442695, %v78_v5 }
  0x23   :  { %148 = vpow2.f32 %v79_v6 }
  0x24   :  { %150 = vpow2.f32 %v81_v7 }
  0x30   :  { %v149_v8 = vpop.eup %148 }
  0x31   :  { %v151_v9 = vpop.eup %150  ;;  %v83_v10 = vadd.f32 1.0, %v149_v8  ;;  %v86_v12 = vmul.f32 -0.5, %v149_v8  ;;  %v89_v19 = vand.u32 2147483647, %v149_v8 }
  0x32   :  { %v92_v11 = vadd.f32 1.0, %v151_v9  ;;  %v95_v13 = vmul.f32 -0.5, %v151_v9  ;;  %v98_v23 = vand.u32 2147483647, %v151_v9 }
  0x33   :  { %152 = vlog2.f32 %v83_v10  ;;  %v87_v16 = vadd.f32 1.0, %v86_v12  ;;  %vm90_vm0 = vcmp.lt.f32.partialorder %v89_v19, 0.0004427343 }
  0x34   :  { %154 = vlog2.f32 %v92_v11  ;;  %v96_v20 = vadd.f32 1.0, %v95_v13  ;;  %vm99_vm1 = vcmp.lt.f32.partialorder %v98_v23, 0.0004427343 }
  0x35   :  { %v88_v24 = vmul.f32 %v149_v8, %v87_v16 }
  0x36   :  { %v97_v27 = vmul.f32 %v151_v9, %v96_v20 }
  0x40   :  { %v153_v25 = vpop.eup %152 }
  0x41   :  { %v155_v28 = vpop.eup %154  ;;  %v85_v30 = vmul.f32 0.6931472, %v153_v25 }
  0x42   :  { %v94_v31 = vmul.f32 0.6931472, %v155_v28 }
  0x43   :  { %v91_v32 = vsel %vm90_vm0, %v88_v24, %v85_v30 }
  0x44   :  { %v100_v33 = vsel %vm99_vm1, %v97_v27, %v94_v31  ;;  %v101_v34 = vadd.f32 %v91_v32, %v73_v26 }
  0x45   :  { %v102_v35 = vadd.f32 %v100_v33, %v74_v29 }
  0x47   :  { %v104_v36 = vadd.f32 %v102_v35, %v101_v34 }
  0x49   :  { %111 = vadd.xlane.f32.xlu0 %v104_v36 }
  0xd2   :  { %v112_v37 = vpop.xlane.xlu0 %111 }
  0xd3   :  { %v113_v38 = vrot.slane %v112_v37, 4 }
  0xd5   :  { %v114_v39 = vadd.f32 %v113_v38, %v112_v37 }
  0xd7   :  { %v115_v40 = vrot.slane %v114_v39, 2 }
  0xd9   :  { %v116_v41 = vadd.f32 %v115_v40, %v114_v39 }
  0xdb   :  { %v117_v42 = vrot.slane %v116_v41, 1 }
  0xdd   :  { %v118_v43 = vadd.f32 %v117_v42, %v116_v41 }
  0xdf   :  { %141 = vpush %v118_v43 }
 0x110   :  { %s142_s0 = spop %141 }
 0x111   :  { %121 = sst [smem:[#allocation8]] %s142_s0 }
 0x112   :  { %129 = dma.smem_to_hbm %s214_s1, 16, %s241_s2, [#allocation5]  }
 0x113   :  { %208 = dma.done.wait [#allocation5], 16  }
 0x114   :  { %209 = vsyncadd [#allocation5], 4294967280 }
 0x115   :  { %133 = sfence }
 0x116   :  { %134 = vsyncpa [#allocation4], 1 }
 0x117   :  { %135 = vsyncpa [#allocation7], 1 }
 0x118   :  { %136 = vsyncpa [#allocation5], 1 }

</bundles_post_ra>
